<compile_context>
chip_gen: v5e
topology: v5e:2x2
jax: 0.10.0
libtpu: 0.0.40
codegen_flags: <defaults>
</compile_context>

<pallas_src>
import math

import jax
import jax.numpy as jnp
from jax.experimental import pallas as pl
from jax.experimental.pallas import tpu as pltpu

LANE = 128                         # vreg lane width
_TARGET_BLOCK_ELEMS = 512 * 1024   # ~2 MiB f32 per buffer (safe on v7x's 64 MiB VMEM)
_WIDTH_CANDIDATES = (4096, 2048, 1024, 512, 256, 128)


def param_to_bit(p):
    return math.exp(p)


def bit_to_param(b):
    return math.log(b)


def _make_fq_kernel(scale, inv_scale, offset, qmax):
    """Elementwise fixed-point fake-quant kernel; all parameters are compile-time
    constants closed over from Python (no SMEM params, no divides)."""

    def kernel(x_ref, o_ref):
        x = x_ref[...].astype(jnp.float32)
        m = x * scale + offset                     # x * 2**(s + b//2) + zp + 2**(b-1)
        q = jnp.clip(jnp.round(m), 0.0, qmax)      # round-half-even, clamp to [0, 2**b - 1]
        o_ref[...] = ((q - offset) * inv_scale).astype(o_ref.dtype)  # exact pow2 reciprocal

    return kernel


def fake_fixed_truncate(x, bits_int, scale_int, zero_point_int):
    """Pallas forward of fake_fixed_truncate (backward is STE, so forward-only here)."""
    bits_int = int(bits_int)
    scale_int = int(scale_int)
    zero_point_int = int(zero_point_int)

    orig_shape = x.shape
    orig_dtype = x.dtype
    n = x.size
    if n == 0:
        return x

    # Quantizer constants (Python scalars, baked into the kernel).
    s = 2.0 ** (scale_int + bits_int // 2)
    inv_s = 2.0 ** -(scale_int + bits_int // 2)
    half = 2.0 ** (bits_int - 1)
    qmax = 2.0 ** bits_int - 1.0
    offset = float(zero_point_int) + half

    xf = x.reshape(-1)

    # Lane-dense layout: widest W (multiple of 128) that divides n => copy-free reshape.
    W = next((w for w in _WIDTH_CANDIDATES if n % w == 0), None)
    padded = False
    if W is None:
        # Tiny / ragged tensors: pad to one narrow slab (copy is negligible here).
        W = 1024 if n >= 1024 else LANE
        n_pad = -(-n // W) * W
        xf = jnp.pad(xf, (0, n_pad - n))
        padded = True
    rows = xf.size // W
    x2 = xf.reshape(rows, W)

    # Row blocking: ~2 MiB per buffer; full-array block when the tensor is small.
    max_rows = max(8, (_TARGET_BLOCK_ELEMS // W) // 8 * 8)
    row_blk = rows if rows <= max_rows else max_rows
    grid = (-(-rows // row_blk),)

    kernel = _make_fq_kernel(s, inv_s, offset, qmax)

    out = pl.pallas_call(
        kernel,
        out_shape=jax.ShapeDtypeStruct((rows, W), orig_dtype),
        grid=grid,
        in_specs=[pl.BlockSpec((row_blk, W), lambda i: (i, 0))],
        out_specs=pl.BlockSpec((row_blk, W), lambda i: (i, 0)),
        compiler_params=pltpu.CompilerParams(
            dimension_semantics=("parallel",)),
        cost_estimate=pl.CostEstimate(
            flops=6 * n,
            bytes_accessed=2 * n * x.dtype.itemsize,
            transcendentals=0),
    )(x2)

    out = out.reshape(-1)
    if padded:
        out = out[:n]
    return out.reshape(orig_shape)


def quant_wrapper_fixed_point_conv2d(x, weight, bias, *,
                                     bits=32.0,
                                     input_scale=0.0, input_zero_point=0.0,
                                     weight_scale=0.0, weight_zero_point=0.0,
                                     bias_scale=0.0, bias_zero_point=0.0,
                                     stride=(1, 1), padding=(1, 1),
                                     dilation=(1, 1), groups=1):
    """QuantWrapperFixedPoint.forward for a wrapped nn.Conv2d (forward pass only)."""
    bits_param = bit_to_param(float(bits))            # nn.Parameter init: log(bits)
    bits_int = int(round(param_to_bit(bits_param)))   # forward: round(exp(param))

    xq = fake_fixed_truncate(x, bits_int, round(input_scale), round(input_zero_point))
    wq = fake_fixed_truncate(weight, bits_int, round(weight_scale), round(weight_zero_point))
    bq = None
    if bias is not None:
        bq = fake_fixed_truncate(bias, bits_int, round(bias_scale), round(bias_zero_point))

    # TODO(synk): the wrapped conv/linear itself is delegated to XLA's conv primitive;
    # only the module's own math (the fake quantizer) is a bespoke Pallas kernel.
    out = jax.lax.conv_general_dilated(
        xq, wq,
        window_strides=tuple(stride),
        padding=[(padding[0], padding[0]), (padding[1], padding[1])],
        rhs_dilation=tuple(dilation),
        feature_group_count=groups,
        dimension_numbers=("NCHW", "OIHW", "NCHW"))
    if bq is not None:
        out = out + bq.reshape(1, -1, 1, 1)
    return out


def _fake_fixed_truncate_ref(x, bits_int, scale_int, zero_point_int):
    """Pure-JAX transliteration of the torch fake_fixed_truncate (for checking)."""
    s = 2.0 ** (scale_int + bits_int // 2)
    half = 2.0 ** (bits_int - 1)
    qmax = 2.0 ** bits_int - 1.0
    xf = x.astype(jnp.float32)
    m = xf * s + zero_point_int + half
    q = jnp.clip(jnp.round(m), 0.0, qmax)
    return ((q - half - zero_point_int) / s).astype(x.dtype)


if __name__ == "__main__":
    key = jax.random.PRNGKey(0)
    kx, kw, kb, kbig = jax.random.split(key, 4)

    # Wrapped module: nn.Conv2d(4, 8, kernel_size=3, padding=1), quantized at bits=8.
    x = jax.random.normal(kx, (2, 4, 16, 16), dtype=jnp.float32) * 2.0
    w = jax.random.normal(kw, (8, 4, 3, 3), dtype=jnp.float32) * 0.5
    b = jax.random.normal(kb, (8,), dtype=jnp.float32) * 0.1
    bits = 8.0

    out = quant_wrapper_fixed_point_conv2d(x, w, b, bits=bits)
    jax.block_until_ready(out)

    bits_int = int(round(param_to_bit(bit_to_param(bits))))

    # Pallas quantizer vs pure-JAX reference on input / weight / bias.
    for t in (x, w, b):
        got = fake_fixed_truncate(t, bits_int, 0, 0)
        want = _fake_fixed_truncate_ref(t, bits_int, 0, 0)
        assert jnp.allclose(got, want, rtol=1e-6, atol=1e-6), "quantizer mismatch"

    # End-to-end forward check (reference quant feeding the same conv).
    xq_r = _fake_fixed_truncate_ref(x, bits_int, 0, 0)
    wq_r = _fake_fixed_truncate_ref(w, bits_int, 0, 0)
    bq_r = _fake_fixed_truncate_ref(b, bits_int, 0, 0)
    out_ref = jax.lax.conv_general_dilated(
        xq_r, wq_r, window_strides=(1, 1), padding=[(1, 1), (1, 1)],
        rhs_dilation=(1, 1), dimension_numbers=("NCHW", "OIHW", "NCHW"))
    out_ref = out_ref + bq_r.reshape(1, -1, 1, 1)
    assert jnp.allclose(out, out_ref, rtol=1e-5, atol=1e-5), "forward mismatch"

    # Also exercise the multi-block (grid > 1) path of the quant kernel.
    x_big = jax.random.normal(kbig, (2, 8, 256, 256), dtype=jnp.float32)
    got_big = fake_fixed_truncate(x_big, bits_int, 0, 0)
    want_big = _fake_fixed_truncate_ref(x_big, bits_int, 0, 0)
    jax.block_until_ready(got_big)
    assert jnp.allclose(got_big, want_big, rtol=1e-6, atol=1e-6), "multi-block mismatch"

    print("KERNEL_OK")
</pallas_src>

<mosaic_0001>
module attributes {stable_mosaic.version = 11 : i64} {
  func.func @kernel(%arg0: i32, %arg1: memref<1x2048xf32, #tpu.memory_space<vmem>>, %arg2: memref<1x2048xf32, #tpu.memory_space<vmem>>) attributes {dimension_semantics = [#tpu.dimension_semantics<parallel>], iteration_bounds = array<i64: 1>, scalar_prefetch = 0 : i64, scratch_operands = 0 : i64, tpu.core_type = #tpu.core_type<tc>, window_params = [{transform_indices = @transform_0, window_bounds = array<i64: 1, 2048>}, {transform_indices = @transform_1, window_bounds = array<i64: 1, 2048>}]} {
    %c0 = arith.constant 0 : index
    %c0_0 = arith.constant 0 : index
    %0 = vector.load %arg1[%c0, %c0_0] : memref<1x2048xf32, #tpu.memory_space<vmem>>, vector<1x2048xf32>
    %cst = arith.constant 1.600000e+01 : f32
    %1 = vector.broadcast %cst : f32 to vector<1x2048xf32>
    %2 = arith.mulf %0, %1 : vector<1x2048xf32>
    %cst_1 = arith.constant 1.280000e+02 : f32
    %3 = vector.broadcast %cst_1 : f32 to vector<1x2048xf32>
    %4 = arith.addf %2, %3 : vector<1x2048xf32>
    %5 = math.roundeven %4 : vector<1x2048xf32>
    %cst_2 = arith.constant 0.000000e+00 : f32
    %cst_3 = arith.constant 2.550000e+02 : f32
    %6 = vector.broadcast %cst_2 : f32 to vector<1x2048xf32>
    %7 = arith.maximumf %6, %5 : vector<1x2048xf32>
    %8 = vector.broadcast %cst_3 : f32 to vector<1x2048xf32>
    %9 = arith.minimumf %8, %7 : vector<1x2048xf32>
    %cst_4 = arith.constant 1.280000e+02 : f32
    %10 = vector.broadcast %cst_4 : f32 to vector<1x2048xf32>
    %11 = arith.subf %9, %10 : vector<1x2048xf32>
    %cst_5 = arith.constant 6.250000e-02 : f32
    %12 = vector.broadcast %cst_5 : f32 to vector<1x2048xf32>
    %13 = arith.mulf %11, %12 : vector<1x2048xf32>
    %c0_6 = arith.constant 0 : index
    %c0_7 = arith.constant 0 : index
    %14 = vector.load %arg2[%c0_6, %c0_7] : memref<1x2048xf32, #tpu.memory_space<vmem>>, vector<1x2048xf32>
    tpu.vector_store %arg2[%c0_6, %c0_7], %13 {strides = array<i32>} : memref<1x2048xf32, #tpu.memory_space<vmem>>, vector<1x2048xf32>,
    return
  }
  func.func @transform_0(%arg0: i32) -> (i32, i32) {
    %c0_i32 = arith.constant 0 : i32
    %c0_i32_0 = arith.constant 0 : i32
    return %arg0, %c0_i32 : i32, i32
  }
  func.func @transform_1(%arg0: i32) -> (i32, i32) {
    %c0_i32 = arith.constant 0 : i32
    %c0_i32_0 = arith.constant 0 : i32
    return %arg0, %c0_i32 : i32, i32
  }
}

</mosaic_0001>

<bundles_post_ra>
// kernel: tpu_custom_call.1
= control target key start
LH: loop header
LB: loop body
LE: loop exit
PB: predicated region body
PF: predicated region fallthrough
CT: control target
= control target key end

     0   :  { %6 = vsyncpa [#allocation3], 0  ;;  %s148_s0 = inlined_call_operand.hbm [shape: f32[1,2048], index: 0, kind: input, shape index: {}]   ;;  %s149_s1 = inlined_call_operand.hbm [shape: f32[1,2048], index: 1, kind: output, shape index: {}]  }
   0x1   :  { %7 = vsyncpa [#allocation4], 0  ;;  %s13_s8 = sshll.u32 %s148_s0, 4  ;;  %s130_s9 = smov [#allocation2]   ;;  %s14_s8 = int_to_ptr.hbm [resolvable:$true] %s13_s8 }
   0x2   :  { %s15_s10 = sshll.u32 %s130_s9, 4  ;;  %s16_s10 = int_to_ptr.vmem [resolvable:$true] %s15_s10 }
   0x3   :  { %18 = dma.hbm_to_vmem [thread:$0]  %s14_s8, 256, %s16_s10, [#allocation3]  }
   0x4   :  { %126 = dma.done.wait [#allocation3], 256  }
   0x5   :  { %127 = vsyncadd [#allocation3], 4294967040  ;;  %v23_v0 = vld [vmem:[#allocation2] sm:$0xff]  ;;  %v24_v1 = vld [vmem:[#allocation2 + $0x8] sm:$0xff]  ;;  %s131_s0 = smov [#allocation5]   ;;  %s48_s14 = sshll.u32 %s149_s1, 4  ;;  %s49_s14 = int_to_ptr.hbm [resolvable:$true] %s48_s14 }
   0x6   :  { %v25_v2 = vmul.f32 16.0, %v23_v0  ;;  %v26_v3 = vmul.f32 16.0, %v24_v1  ;;  %s46_s11 = sshll.u32 %s131_s0, 4  ;;  %s47_s11 = int_to_ptr.vmem [resolvable:$true] %s46_s11 }
   0x8   :  { %v27_v4 = vadd.f32 128.0, %v25_v2  ;;  %v28_v5 = vadd.f32 128.0, %v26_v3 }
   0xa   :  { %v62_v6 = vcvt.f32.s32 %v27_v4  ;;  %v60_v7 = vand.u32 2147483647, %v27_v4  ;;  %v70_v8 = vcvt.f32.s32 %v28_v5  ;;  %v65_v10 = vand.u32 2147483648, %v27_v4 }
   0xb   :  { %v68_v11 = vand.u32 2147483647, %v28_v5  ;;  %v73_v13 = vand.u32 2147483648, %v28_v5 }
   0xc   :  { %v63_v9 = vcvt.s32.f32 %v62_v6  ;;  %v71_v12 = vcvt.s32.f32 %v70_v8  ;;  %vm61_vm0 = vcmp.lt.f32.partialorder %v60_v7, 8388608.0 }
   0xd   :  { %vm69_vm1 = vcmp.lt.f32.partialorder %v68_v11, 8388608.0 }
   0xe   :  { %v64_v14 = vand.u32 2147483647, %v63_v9  ;;  %v72_v15 = vand.u32 2147483647, %v71_v12 }
  0x10   :  { %v66_v16 = vor.u32 %v65_v10, %v64_v14  ;;  %v74_v17 = vor.u32 %v73_v13, %v72_v15 }
  0x12   :  { %v67_v18 = vsel %vm61_vm0, %v66_v16, %v27_v4  ;;  %v75_v20 = vsel %vm69_vm1, %v74_v17, %v28_v5 }
  0x13   :  { %v31_v19 = vmax.f32 %v67_v18, 0.0  ;;  %v32_v21 = vmax.f32 %v75_v20, 0.0 }
  0x15   :  { %v33_v22 = vmin.f32 %v31_v19, 255.0  ;;  %v34_v23 = vmin.f32 %v32_v21, 255.0 }
  0x17   :  { %v58_v24 = vadd.f32 -128.0, %v33_v22  ;;  %v59_v25 = vadd.f32 -128.0, %v34_v23 }
  0x19   :  { %v37_v26 = vmul.f32 0.0625, %v58_v24  ;;  %v38_v27 = vmul.f32 0.0625, %v59_v25 }
  0x1b   :  { %39 = vst [vmem:[#allocation5] sm:$0xff] %v37_v26 }
  0x1c   :  { %40 = vst [vmem:[#allocation5 + $0x8] sm:$0xff] %v38_v27 }
  0x1d   :  { %51 = dma.vmem_to_hbm [thread:$0]  %s47_s11, 256, %s49_s14, [#allocation4]  }
  0x1e   :  { %128 = dma.done.wait [#allocation4], 256  }
  0x1f   :  { %129 = vsyncadd [#allocation4], 4294967040 }
  0x20   :  { %56 = vsyncpa [#allocation3], 1 }
  0x21   :  { %57 = vsyncpa [#allocation4], 1 }

</bundles_post_ra>
